<compile_context>
chip_gen: v5e
topology: v5e:2x2
jax: 0.10.0
libtpu: 0.0.40
codegen_flags: <defaults>
</compile_context>

<pallas_src>
import math

import numpy as np
import jax
import jax.numpy as jnp
from jax.experimental import pallas as pl
from jax.experimental.pallas import tpu as pltpu


def _round_up(x, m):
    return ((x + m - 1) // m) * m


def _divisors(n):
    ds = set()
    i = 1
    while i * i <= n:
        if n % i == 0:
            ds.add(i)
            ds.add(n // i)
        i += 1
    return sorted(ds)


def _pick_row_tile(total_rows, unit, target_rows):
    """Largest multiple of `unit` dividing total_rows and <= target; falls back to a
    single full-size block (covered by the full-dim BlockSpec exception)."""
    if total_rows % unit != 0:
        return total_rows
    best = unit
    for d in _divisors(total_rows // unit):
        cand = unit * d
        if best < cand <= max(target_rows, unit):
            best = cand
    return best


def _vmem_limit_bytes():
    """Generation-aware scoped-VMEM budget (3/4 of physical, capped)."""
    try:
        info = pltpu.get_tpu_info()
        phys = getattr(info, "vmem_capacity_bytes", None)
        if phys:
            return int(min(phys * 3 // 4, 112 * 1024 * 1024))
    except Exception:
        pass
    return 48 * 1024 * 1024  # safe on v5e/v6e (128 MiB) and v7x (64 MiB)


def encoder_block_2d(x_nchw, weight, bias, gamma, beta, *, eps=1e-5):
    """Forward pass of EncoderBlock2D. x_nchw: (N, Cin, H, W) float32 -> (N, Cout, H/2, W/2)."""
    del bias  # Conv bias is exactly cancelled by the train-mode BN batch-mean subtraction.

    N, Cin, H, W = x_nchw.shape
    Cout = weight.shape[0]
    assert H % 2 == 0 and W % 2 == 0, "AvgPool2d(2) path requires even H, W"
    Ho, Wo = H // 2, W // 2

    CP = max(64, _round_up(Cout, 64))   # lane-padded output channels per w-parity half
    K3 = 12 * Cin                        # (3 ky) x (4-wide w window) x Cin packed taps
    K3P = _round_up(K3, 8)
    ROWS = N * H * Wo                    # one packed row per (n, h, pooled-w j)
    vmem_limit = _vmem_limit_bytes()

    # ------------------------------------------------------------------
    # Wrapper prologue (bf16 from the start; O(N*H*W*Cin), no (NHW)^2 structures).
    # Row (n, h, j) carries in its lanes the full 3x4xCin input window producing BOTH
    # conv outputs (h, 2j) and (h, 2j+1)  ->  row tiles need no halo; one matmul/tile.
    # ------------------------------------------------------------------
    xb = jnp.transpose(x_nchw.astype(jnp.bfloat16), (0, 2, 3, 1))          # NHWC bf16
    xpad = jnp.pad(xb, ((0, 0), (1, 1), (1, 1), (0, 0)))                   # (N, H+2, W+2, Cin)
    ev = xpad[:, :, 0::2, :]                                               # cols 2j
    od = xpad[:, :, 1::2, :]                                               # cols 2j+1
    win = jnp.stack([ev[:, :, :Wo], od[:, :, :Wo],
                     ev[:, :, 1:Wo + 1], od[:, :, 1:Wo + 1]], axis=3)      # p = 0..3
    taps = jnp.concatenate([win[:, ky:ky + H] for ky in range(3)], axis=3)  # (N,H,Wo,12,Cin)
    xpack = taps.reshape(ROWS, K3)
    if K3P > K3:
        xpack = jnp.pad(xpack, ((0, 0), (0, K3P - K3)))

    # Weight repack: wk[(ky*4+p)*Cin+ci, b*CP+co] = w[co,ci,ky,kx], kx = p-b in [0,2].
    wt = jnp.transpose(weight.astype(jnp.float32), (1, 0, 2, 3))            # (Cin, Cout, 3, 3)
    wk = jnp.zeros((3, 4, Cin, 2, CP), jnp.float32)
    for ky in range(3):
        for kx in range(3):
            for b in range(2):
                wk = wk.at[ky, b + kx, :, b, :Cout].set(wt[:, :, ky, kx])
    wk = wk.reshape(K3, 2 * CP)
    if K3P > K3:
        wk = jnp.pad(wk, ((0, K3P - K3), (0, 0)))
    wk = wk.astype(jnp.bfloat16)

    # ------------------------------------------------------------------
    # Pass 1 (stats only): per-tile channel sum + CENTERED sum-of-squares.
    # ------------------------------------------------------------------
    byte_cap1 = max(16, (4 * 1024 * 1024) // (K3P * 2))
    RB1 = _pick_row_tile(ROWS, 16, min(1024, byte_cap1))
    T1 = ROWS // RB1
    inv_rb1 = 1.0 / RB1

    def _stats_kernel(x_ref, w_ref, stats_ref):
        conv = jnp.dot(x_ref[...], w_ref[...], preferred_element_type=jnp.float32)
        s1 = jnp.sum(conv, axis=0, keepdims=True)                # (1, 2*CP) per-lane sum
        mu = s1 * inv_rb1
        d = conv - mu
        m2 = jnp.sum(d * d, axis=0, keepdims=True)               # centered sum of squares
        stats_ref[pl.ds(0, 1), :] = s1
        stats_ref[pl.ds(1, 1), :] = m2                           # rows 2..7: pad, never read

    stats = pl.pallas_call(
        _stats_kernel,
        out_shape=jax.ShapeDtypeStruct((T1 * 8, 2 * CP), jnp.float32),
        grid=(T1,),
        in_specs=[pl.BlockSpec((RB1, K3P), lambda t: (t, 0)),
                  pl.BlockSpec((K3P, 2 * CP), lambda t: (0, 0))],
        out_specs=pl.BlockSpec((8, 2 * CP), lambda t: (t, 0)),
        compiler_params=pltpu.CompilerParams(
            dimension_semantics=("parallel",),
            vmem_limit_bytes=vmem_limit),
    )(xpack, wk)

    # ------------------------------------------------------------------
    # Fold partial stats (parallel-variance combine over (tile, parity) groups).
    # ------------------------------------------------------------------
    stats = stats.reshape(T1, 8, 2 * CP)
    s1 = stats[:, 0, :]
    m2 = stats[:, 1, :]
    s1g = jnp.concatenate([s1[:, :CP], s1[:, CP:]], axis=0)      # (2*T1, CP)
    m2g = jnp.concatenate([m2[:, :CP], m2[:, CP:]], axis=0)
    count = float(N * H * W)                                     # == 2 * T1 * RB1
    mean = jnp.sum(s1g, axis=0) / count
    mug = s1g * inv_rb1
    var = (jnp.sum(m2g, axis=0) + RB1 * jnp.sum((mug - mean) ** 2, axis=0)) / count
    var = jnp.maximum(var, 0.0)

    gamma_p = jnp.pad(gamma.astype(jnp.float32), (0, CP - Cout))
    beta_p = jnp.pad(beta.astype(jnp.float32), (0, CP - Cout))
    scale = gamma_p * jax.lax.rsqrt(var + eps)
    shift = beta_p - mean * scale
    scale2 = jnp.tile(scale, 2).reshape(1, 2 * CP)
    shift2 = jnp.tile(shift, 2).reshape(1, 2 * CP)

    # ------------------------------------------------------------------
    # Pass 2: recompute conv (one MXU matmul per tile) + fused BN affine +
    #         LeakyReLU(0.2) + Dropout2d(p=0)=identity + AvgPool2d(2) on the VPU.
    # ------------------------------------------------------------------
    unit2 = (2 * Wo) * 16 // math.gcd(2 * Wo, 16)                # lcm(2*Wo, 16) conv rows
    per_row_bytes = K3P * 2 + CP * 2 + 3 * (2 * CP) * 4          # in + out + f32 temps
    target2 = max(unit2, min(2048, (6 * 1024 * 1024) // per_row_bytes))
    if Wo % 8 != 0:
        target2 = min(target2, 16 * Wo)                          # cap unrolled fallback
    RB2 = _pick_row_tile(ROWS, unit2, target2)
    T2 = ROWS // RB2
    THP2 = RB2 // (2 * Wo)                                       # pooled image-rows / block
    OB2 = THP2 * Wo                                              # pooled output rows / block

    def _fused_kernel(scale_ref, shift_ref, w_ref, x_ref, out_ref):
        conv = jnp.dot(x_ref[...], w_ref[...], preferred_element_type=jnp.float32)
        y = conv * scale_ref[...] + shift_ref[...]
        a = jnp.where(y > 0, y, 0.2 * y)                         # LeakyReLU(0.2); Dropout(p=0)=id
        if Wo % 8 == 0:
            a4 = a.reshape(THP2, 2, Wo, 2 * CP)                  # layout-preserving split
            hp = (a4[:, 0] + a4[:, 1]).reshape(OB2, 2 * CP)      # pool over h pairs
        else:
            # TODO(synk): layout-friendly h-pair pooling for Wo % 8 != 0.
            hp = jnp.concatenate(
                [a[(2 * t) * Wo:(2 * t + 1) * Wo] + a[(2 * t + 1) * Wo:(2 * t + 2) * Wo]
                 for t in range(THP2)], axis=0)
        out_ref[...] = 0.25 * (hp[:, :CP] + hp[:, CP:])          # pool over w parities (lanes)

    out2d = pl.pallas_call(
        _fused_kernel,
        out_shape=jax.ShapeDtypeStruct((N * Ho * Wo, CP), jnp.float32),
        grid=(T2,),
        in_specs=[pl.BlockSpec((1, 2 * CP), lambda t: (0, 0)),
                  pl.BlockSpec((1, 2 * CP), lambda t: (0, 0)),
                  pl.BlockSpec((K3P, 2 * CP), lambda t: (0, 0)),
                  pl.BlockSpec((RB2, K3P), lambda t: (t, 0))],
        out_specs=pl.BlockSpec((OB2, CP), lambda t: (t, 0)),
        compiler_params=pltpu.CompilerParams(
            dimension_semantics=("parallel",),
            vmem_limit_bytes=vmem_limit),
    )(scale2, shift2, wk, xpack)

    out = out2d.reshape(N, Ho, Wo, CP)[..., :Cout]
    return jnp.transpose(out, (0, 3, 1, 2))                      # PyTorch NCHW output layout


def _reference(x_nchw, weight, bias, gamma, beta):
    """Pure-JAX f32 reference of the same forward pass (for validation)."""
    x = jnp.transpose(x_nchw, (0, 2, 3, 1)).astype(jnp.float32)
    conv = jax.lax.conv_general_dilated(
        x, jnp.transpose(weight, (2, 3, 1, 0)).astype(jnp.float32),
        window_strides=(1, 1), padding=((1, 1), (1, 1)),
        dimension_numbers=("NHWC", "HWIO", "NHWC")) + bias
    mean = conv.mean(axis=(0, 1, 2), keepdims=True)
    var = ((conv - mean) ** 2).mean(axis=(0, 1, 2), keepdims=True)
    y = gamma * (conv - mean) * jax.lax.rsqrt(var + 1e-5) + beta
    act = jnp.where(y > 0, y, 0.2 * y)
    N, H, W, C = act.shape
    pooled = act.reshape(N, H // 2, 2, W // 2, 2, C).mean(axis=(2, 4))
    return pooled.transpose(0, 3, 1, 2)


if __name__ == "__main__":
    N, Cin, Cout, H, W = 2, 4, 8, 16, 16

    key = jax.random.PRNGKey(0)
    kx, kw = jax.random.split(key)

    # Deterministic parameter init matching EncoderBlock2D.init_model():
    #   Conv2d weight: kaiming_normal_ (fan_in, gain=sqrt(2)); Conv2d bias: 0.
    #   BatchNorm2d: weight(gamma)=1, bias(beta)=0 (default init).
    fan_in = Cin * 3 * 3
    w_std = float(np.sqrt(2.0 / fan_in))
    weight = jax.random.normal(kw, (Cout, Cin, 3, 3), dtype=jnp.float32) * w_std
    bias = jnp.zeros((Cout,), jnp.float32)
    gamma = jnp.ones((Cout,), jnp.float32)
    beta = jnp.zeros((Cout,), jnp.float32)

    x = jax.random.normal(kx, (N, Cin, H, W), dtype=jnp.float32)

    out = jax.block_until_ready(encoder_block_2d(x, weight, bias, gamma, beta))
    ref = jax.block_until_ready(_reference(x, weight, bias, gamma, beta))

    assert out.shape == (N, Cout, H // 2, W // 2), out.shape
    # bf16 matmul operands with f32 accumulation -> compare at bf16-level tolerance.
    np.testing.assert_allclose(np.asarray(out), np.asarray(ref),
                               rtol=2e-2, atol=2e-2)
    print("KERNEL_OK")
</pallas_src>

<mosaic_0001>
module attributes {stable_mosaic.version = 11 : i64} {
  func.func @_stats_kernel(%arg0: i32, %arg1: memref<256x48xbf16, #tpu.memory_space<vmem>>, %arg2: memref<48x128xbf16, #tpu.memory_space<vmem>>, %arg3: memref<8x128xf32, #tpu.memory_space<vmem>>) attributes {dimension_semantics = [#tpu.dimension_semantics<parallel>], iteration_bounds = array<i64: 1>, scalar_prefetch = 0 : i64, scratch_operands = 0 : i64, tpu.core_type = #tpu.core_type<tc>, window_params = [{transform_indices = @transform_0, window_bounds = array<i64: 256, 48>}, {pipeline_mode = #tpu.pipeline_mode<synchronous>, transform_indices = @transform_1, window_bounds = array<i64: 48, 128>}, {transform_indices = @transform_2, window_bounds = array<i64: 8, 128>}]} {
    %c0 = arith.constant 0 : index
    %c0_0 = arith.constant 0 : index
    %0 = vector.load %arg1[%c0, %c0_0] : memref<256x48xbf16, #tpu.memory_space<vmem>>, vector<256x48xbf16>
    %c0_1 = arith.constant 0 : index
    %c0_2 = arith.constant 0 : index
    %1 = vector.load %arg2[%c0_1, %c0_2] : memref<48x128xbf16, #tpu.memory_space<vmem>>, vector<48x128xbf16>
    %cst = arith.constant dense<0.000000e+00> : vector<256x128xf32>
    %2 = tpu.matmul %0, %1, %cst {dimension_numbers = #tpu.dot_dimension_numbers<[1], [0], [0], [1], [0, 0, 1, 1], [], []>} : vector<256x48xbf16>, vector<48x128xbf16>, vector<256x128xf32> -> vector<256x128xf32>
    %cst_3 = arith.constant dense<0.000000e+00> : vector<128xf32>
    %3 = vector.multi_reduction <add>, %2, %cst_3 [0] : vector<256x128xf32> to vector<128xf32>
    %4 = vector.shape_cast %3 : vector<128xf32> to vector<1x128xf32>
    %cst_4 = arith.constant 3.906250e-03 : f32
    %5 = vector.broadcast %cst_4 : f32 to vector<1x128xf32>
    %6 = arith.mulf %4, %5 : vector<1x128xf32>
    %7 = vector.broadcast %6 : vector<1x128xf32> to vector<256x128xf32>
    %8 = arith.subf %2, %7 : vector<256x128xf32>
    %9 = arith.mulf %8, %8 : vector<256x128xf32>
    %cst_5 = arith.constant dense<0.000000e+00> : vector<128xf32>
    %10 = vector.multi_reduction <add>, %9, %cst_5 [0] : vector<256x128xf32> to vector<128xf32>
    %11 = vector.shape_cast %10 : vector<128xf32> to vector<1x128xf32>
    %c0_6 = arith.constant 0 : index
    %c0_7 = arith.constant 0 : index
    %12 = vector.load %arg3[%c0_6, %c0_7] : memref<8x128xf32, #tpu.memory_space<vmem>>, vector<1x128xf32>
    tpu.vector_store %arg3[%c0_6, %c0_7], %4 {strides = array<i32>} : memref<8x128xf32, #tpu.memory_space<vmem>>, vector<1x128xf32>,
    %c1 = arith.constant 1 : index
    %c0_8 = arith.constant 0 : index
    %13 = vector.load %arg3[%c1, %c0_8] : memref<8x128xf32, #tpu.memory_space<vmem>>, vector<1x128xf32>
    tpu.vector_store %arg3[%c1, %c0_8], %11 {strides = array<i32>} : memref<8x128xf32, #tpu.memory_space<vmem>>, vector<1x128xf32>,
    return
  }
  func.func @transform_0(%arg0: i32) -> (i32, i32) {
    %c0_i32 = arith.constant 0 : i32
    %c0_i32_0 = arith.constant 0 : i32
    return %arg0, %c0_i32 : i32, i32
  }
  func.func @transform_1(%arg0: i32) -> (i32, i32) {
    %c0_i32 = arith.constant 0 : i32
    %c0_i32_0 = arith.constant 0 : i32
    %c0_i32_1 = arith.constant 0 : i32
    return %c0_i32, %c0_i32_0 : i32, i32
  }
  func.func @transform_2(%arg0: i32) -> (i32, i32) {
    %c0_i32 = arith.constant 0 : i32
    %c0_i32_0 = arith.constant 0 : i32
    return %arg0, %c0_i32 : i32, i32
  }
}

</mosaic_0001>

<bundles_post_ra>
// kernel: tpu_custom_call.1
= control target key start
LH: loop header
LB: loop body
LE: loop exit
PB: predicated region body
PF: predicated region fallthrough
CT: control target
= control target key end

     0   :  { %s841_s0 = inlined_call_operand.vmem [shape: bf16[256,48], index: 0, kind: input, shape index: {}]   ;;  %s842_s1 = inlined_call_operand.vmem [shape: bf16[48,128], index: 1, kind: input, shape index: {}]   ;;  %s843_s2 = inlined_call_operand.hbm [shape: f32[8,128], index: 2, kind: output, shape index: {}]  }
   0x1   :  { %v554_v0 = vld [vmem:[%s842_s1 + $0x10] sm:$0xff]  ;;  %v553_v1 = vld [vmem:[%s842_s1 + $0x8] sm:$0xff] }
   0x2   :  { %203 = vmatpush.bf16.msra.mxu0 %v554_v0  ;;  %555 = vmatpush.bf16.msra.mxu1 %v554_v0 }
   0x3   :  { %556 = vmatpush.bf16.msra.mxu2 %v554_v0  ;;  %557 = vmatpush.bf16.msra.mxu3 %v554_v0 }
   0x4   :  { %7 = vsyncpa [#allocation3], 0  ;;  %v552_v2 = vld [vmem:[%s842_s1] sm:$0xff]  ;;  %vm149_vm0 = vcmask 392192   ;;  %v537_v7 = vld [vmem:[%s841_s0 + $0x8] sm:$0xff]  ;;  %s435_s1 = sshll.u32 %s843_s2, 4  ;;  %s436_s1 = int_to_ptr.hbm [resolvable:$true] %s435_s1 }
   0x5   :  { %v536_v3 = vld [vmem:[%s841_s0] sm:$0xff]  ;;  %v541_v8 = vld [vmem:[%s841_s0 + $0x28] sm:$0xff]  ;;  %v538_v11 = vld [vmem:[%s841_s0 + $0x10] sm:$0xff] }
   0x6   :  { %204 = vmatpush.bf16.msra.mxu0 %v553_v1  ;;  %558 = vmatpush.bf16.msra.mxu1 %v553_v1  ;;  %v540_v4 = vld [vmem:[%s841_s0 + $0x20] sm:$0xff]  ;;  %v545_v9 = vld [vmem:[%s841_s0 + $0x48] sm:$0xff]  ;;  %v542_v12 = vld [vmem:[%s841_s0 + $0x30] sm:$0xff] }
   0x7   :  { %559 = vmatpush.bf16.msra.mxu2 %v553_v1  ;;  %560 = vmatpush.bf16.msra.mxu3 %v553_v1  ;;  %v544_v5 = vld [vmem:[%s841_s0 + $0x40] sm:$0xff]  ;;  %v549_v10 = vld [vmem:[%s841_s0 + $0x68] sm:$0xff]  ;;  %v546_v13 = vld [vmem:[%s841_s0 + $0x50] sm:$0xff] }
   0x8   :  { %v548_v6 = vld [vmem:[%s841_s0 + $0x60] sm:$0xff]  ;;  %v550_v14 = vld [vmem:[%s841_s0 + $0x70] sm:$0xff]  ;;  %v539_v15 = vld [vmem:[%s841_s0 + $0x18] sm:$0xff] }
   0x9   :  { %v543_v16 = vld [vmem:[%s841_s0 + $0x38] sm:$0xff] }
   0xa   :  { %205 = vmatpush.bf16.msra.mxu0 %v552_v2  ;;  %561 = vmatpush.bf16.msra.mxu1 %v552_v2  ;;  %v547_v17 = vld [vmem:[%s841_s0 + $0x58] sm:$0xff] }
   0xb   :  { %562 = vmatpush.bf16.msra.mxu2 %v552_v2  ;;  %563 = vmatpush.bf16.msra.mxu3 %v552_v2  ;;  %v551_v18 = vld [vmem:[%s841_s0 + $0x78] sm:$0xff]  ;;  %s591_s0 = smov [#allocation2]  }
   0xc   :  { %s433_s18 = sshll.u32 %s591_s0, 4  ;;  %s434_s18 = int_to_ptr.vmem [resolvable:$true] %s433_s18 }
   0xd   :  { %520 = vmatmul.msk.bf16.vlgmr.msra.gmra.mxu0 %vm149_vm0, %v536_v3  ;;  %524 = vmatmul.msk.bf16.vlgmr.msra.gmra.mxu1 %vm149_vm0, %v540_v4 }
   0xe   :  { %528 = vmatmul.msk.bf16.vlgmr.msra.gmra.mxu2 %vm149_vm0, %v544_v5  ;;  %532 = vmatmul.msk.bf16.vlgmr.msra.gmra.mxu3 %vm149_vm0, %v548_v6 }
  0x1d   :  { %521 = vmatmul.msk.bf16.gmra.mxu0 %vm149_vm0, %v537_v7  ;;  %525 = vmatmul.msk.bf16.gmra.mxu1 %vm149_vm0, %v541_v8 }
  0x1e   :  { %529 = vmatmul.msk.bf16.gmra.mxu2 %vm149_vm0, %v545_v9  ;;  %533 = vmatmul.msk.bf16.gmra.mxu3 %vm149_vm0, %v549_v10 }
  0x2d   :  { %522 = vmatmul.msk.bf16.gmra.mxu0 %vm149_vm0, %v538_v11  ;;  %526 = vmatmul.msk.bf16.gmra.mxu1 %vm149_vm0, %v542_v12 }
  0x2e   :  { %530 = vmatmul.msk.bf16.gmra.mxu2 %vm149_vm0, %v546_v13  ;;  %534 = vmatmul.msk.bf16.gmra.mxu3 %vm149_vm0, %v550_v14 }
  0x3d   :  { %523 = vmatmul.msk.bf16.gmra.mxu0 %vm149_vm0, %v539_v15  ;;  %527 = vmatmul.msk.bf16.gmra.mxu1 %vm149_vm0, %v543_v16 }
  0x3e   :  { %531 = vmatmul.msk.bf16.gmra.mxu2 %vm149_vm0, %v547_v17  ;;  %535 = vmatmul.msk.bf16.gmra.mxu3 %vm149_vm0, %v551_v18 }
  0x8a   :  { %v680_v19 = vpop.f32.mrf.mxu0  ;;  %v682_v20 = vpop.f32.mrf.mxu1 }
  0x91   :  { %v690_v24 = vpop.f32.mrf.mxu2  ;;  %v702_v30 = vpop.f32.mrf.mxu3 }
  0x92   :  { %v684_v21 = vpop.f32.mrf.mxu0  ;;  %v686_v22 = vpop.f32.mrf.mxu1 }
  0x93   :  { %v287_v35 = vadd.f32 %v684_v21, %v680_v19 }
  0x99   :  { %v696_v27 = vpop.f32.mrf.mxu2  ;;  %v710_v34 = vpop.f32.mrf.mxu3 }
  0x9a   :  { %v688_v23 = vpop.f32.mrf.mxu0  ;;  %v692_v25 = vpop.f32.mrf.mxu1 }
  0x9b   :  { %v288_v36 = vadd.f32 %v287_v35, %v688_v23 }
  0xa1   :  { %v704_v31 = vpop.f32.mrf.mxu2  ;;  %v724_v43 = vpop.f32.mrf.mxu3 }
  0xa2   :  { %v694_v26 = vpop.f32.mrf.mxu0  ;;  %v700_v29 = vpop.f32.mrf.mxu1 }
  0xa3   :  { %v289_v39 = vadd.f32 %v288_v36, %v694_v26 }
  0xa9   :  { %v717_v38 = vpop.f32.mrf.mxu2  ;;  %v734_v52 = vpop.f32.mrf.mxu3 }
  0xaa   :  { %v698_v28 = vpop.f32.mrf.mxu0  ;;  %v708_v33 = vpop.f32.mrf.mxu1 }
  0xab   :  { %v290_v40 = vadd.f32 %v289_v39, %v698_v28 }
  0xb1   :  { %v727_v47 = vpop.f32.mrf.mxu2  ;;  %v745_v60 = vpop.f32.mrf.mxu3 }
  0xb2   :  { %v706_v32 = vpop.f32.mrf.mxu0  ;;  %v721_v41 = vpop.f32.mrf.mxu1 }
  0xb3   :  { %v291_v42 = vadd.f32 %v290_v40, %v706_v32 }
  0xb9   :  { %v738_v55 = vpop.f32.mrf.mxu2  ;;  %v754_v3 = vpop.f32.mrf.mxu3 }
  0xba   :  { %v715_v37 = vpop.f32.mrf.mxu0  ;;  %v731_v50 = vpop.f32.mrf.mxu1 }
  0xbb   :  { %v292_v44 = vadd.f32 %v291_v42, %v715_v37 }
  0xc1   :  { %v749_v63 = vpop.f32.mrf.mxu2  ;;  %v763_v10 = vpop.f32.mrf.mxu3 }
  0xc2   :  { %v224_v45 = vpop.f32.mrf.mxu0  ;;  %v742_v58 = vpop.f32.mrf.mxu1 }
  0xc3   :  { %v293_v46 = vadd.f32 %v292_v44, %v224_v45 }
  0xc5   :  { %v294_v48 = vadd.f32 %v293_v46, %v682_v20 }
  0xc7   :  { %v295_v49 = vadd.f32 %v294_v48, %v686_v22 }
  0xc9   :  { %v296_v51 = vadd.f32 %v295_v49, %v692_v25  ;;  %v758_v6 = vpop.f32.mrf.mxu2  ;;  %v770_v16 = vpop.f32.mrf.mxu3 }
  0xcb   :  { %v297_v53 = vadd.f32 %v296_v51, %v700_v29 }
  0xcd   :  { %v298_v54 = vadd.f32 %v297_v53, %v708_v33 }
  0xcf   :  { %v299_v56 = vadd.f32 %v298_v54, %v721_v41 }
  0xd1   :  { %v300_v57 = vadd.f32 %v299_v56, %v731_v50 }
  0xd3   :  { %v301_v59 = vadd.f32 %v300_v57, %v742_v58 }
  0xd5   :  { %v302_v61 = vadd.f32 %v301_v59, %v690_v24 }
  0xd7   :  { %v303_v62 = vadd.f32 %v302_v61, %v696_v27 }
  0xd9   :  { %v304_v0 = vadd.f32 %v303_v62, %v704_v31 }
  0xdb   :  { %v305_v1 = vadd.f32 %v304_v0, %v717_v38 }
  0xdd   :  { %v306_v2 = vadd.f32 %v305_v1, %v727_v47 }
  0xdf   :  { %v307_v4 = vadd.f32 %v306_v2, %v738_v55 }
  0xe1   :  { %v308_v5 = vadd.f32 %v307_v4, %v749_v63 }
  0xe3   :  { %v309_v7 = vadd.f32 %v308_v5, %v758_v6 }
  0xe5   :  { %v310_v8 = vadd.f32 %v309_v7, %v702_v30 }
  0xe7   :  { %v311_v9 = vadd.f32 %v310_v8, %v710_v34 }
  0xe9   :  { %v312_v11 = vadd.f32 %v311_v9, %v724_v43 }
  0xeb   :  { %v313_v12 = vadd.f32 %v312_v11, %v734_v52 }
  0xed   :  { %v314_v13 = vadd.f32 %v313_v12, %v745_v60 }
  0xef   :  { %v315_v14 = vadd.f32 %v314_v13, %v754_v3 }
  0xf1   :  { %v316_v15 = vadd.f32 %v315_v14, %v763_v10 }
  0xf3   :  { %v317_v17 = vadd.f32 %v316_v15, %v770_v16 }
  0xf5   :  { %v318_v18 = vrot.slane %v317_v17, 4 }
  0xf7   :  { %v319_v35 = vadd.f32 %v318_v18, %v317_v17 }
  0xf9   :  { %v320_v36 = vrot.slane %v319_v35, 2 }
  0xfb   :  { %v321_v39 = vadd.f32 %v320_v36, %v319_v35 }
  0xfd   :  { %v322_v40 = vrot.slane %v321_v39, 1 }
  0xff   :  { %v323_v42 = vadd.f32 %v322_v40, %v321_v39 }
 0x101   :  { %426 = vst [vmem:[#allocation2] sm:$0x1] %v323_v42  ;;  %v773_v44 = vmul.f32 0.00390625, %v323_v42 }
 0x103   :  { %v325_v46 = vsub.f32 %v680_v19, %v773_v44  ;;  %v326_v48 = vsub.f32 %v684_v21, %v773_v44  ;;  %v327_v49 = vsub.f32 %v688_v23, %v773_v44  ;;  %v328_v54 = vsub.f32 %v694_v26, %v773_v44 }
 0x104   :  { %v329_v56 = vsub.f32 %v698_v28, %v773_v44  ;;  %v330_v61 = vsub.f32 %v706_v32, %v773_v44  ;;  %v331_v21 = vsub.f32 %v715_v37, %v773_v44  ;;  %v332_v1 = vsub.f32 %v224_v45, %v773_v44 }
 0x105   :  { %v357_v51 = vmul.f32 %v325_v46, %v325_v46  ;;  %v358_v53 = vmul.f32 %v326_v48, %v326_v48  ;;  %v359_v57 = vmul.f32 %v327_v49, %v327_v49  ;;  %v360_v19 = vmul.f32 %v328_v54, %v328_v54 }
 0x106   :  { %v361_v0 = vmul.f32 %v329_v56, %v329_v56  ;;  %v362_v2 = vmul.f32 %v330_v61, %v330_v61  ;;  %v333_v26 = vsub.f32 %v682_v20, %v773_v44  ;;  %v363_v28 = vmul.f32 %v331_v21, %v331_v21 }
 0x107   :  { %v389_v59 = vadd.f32 %v358_v53, %v357_v51  ;;  %v334_v7 = vsub.f32 %v686_v22, %v773_v44  ;;  %v364_v32 = vmul.f32 %v332_v1, %v332_v1  ;;  %v335_v9 = vsub.f32 %v692_v25, %v773_v44 }
 0x108   :  { %v365_v37 = vmul.f32 %v333_v26, %v333_v26  ;;  %v336_v45 = vsub.f32 %v700_v29, %v773_v44  ;;  %v337_v20 = vsub.f32 %v708_v33, %v773_v44  ;;  %v338_v22 = vsub.f32 %v721_v41, %v773_v44 }
 0x109   :  { %v390_v62 = vadd.f32 %v389_v59, %v359_v57  ;;  %v366_v12 = vmul.f32 %v334_v7, %v334_v7  ;;  %v367_v14 = vmul.f32 %v335_v9, %v335_v9  ;;  %v339_v25 = vsub.f32 %v731_v50, %v773_v44 }
 0x10a   :  { %v368_v17 = vmul.f32 %v336_v45, %v336_v45  ;;  %v369_v35 = vmul.f32 %v337_v20, %v337_v20  ;;  %v340_v29 = vsub.f32 %v742_v58, %v773_v44  ;;  %v370_v39 = vmul.f32 %v338_v22, %v338_v22 }
 0x10b   :  { %v391_v23 = vadd.f32 %v390_v62, %v360_v19  ;;  %v341_v33 = vsub.f32 %v690_v24, %v773_v44  ;;  %v371_v42 = vmul.f32 %v339_v25, %v339_v25  ;;  %v342_v41 = vsub.f32 %v696_v27, %v773_v44 }
 0x10c   :  { %v372_v48 = vmul.f32 %v340_v29, %v340_v29  ;;  %v343_v50 = vsub.f32 %v704_v31, %v773_v44  ;;  %v344_v58 = vsub.f32 %v717_v38, %v773_v44  ;;  %v345_v24 = vsub.f32 %v727_v47, %v773_v44 }
 0x10d   :  { %v392_v4 = vadd.f32 %v391_v23, %v361_v0  ;;  %v373_v51 = vmul.f32 %v341_v33, %v341_v33  ;;  %v374_v54 = vmul.f32 %v342_v41, %v342_v41  ;;  %v346_v27 = vsub.f32 %v738_v55, %v773_v44 }
 0x10e   :  { %v375_v57 = vmul.f32 %v343_v50, %v343_v50  ;;  %v376_v61 = vmul.f32 %v344_v58, %v344_v58  ;;  %v347_v31 = vsub.f32 %v749_v63, %v773_v44  ;;  %v377_v62 = vmul.f32 %v345_v24, %v345_v24 }
 0x10f   :  { %v393_v5 = vadd.f32 %v392_v4, %v362_v2  ;;  %v348_v38 = vsub.f32 %v758_v6, %v773_v44  ;;  %v378_v0 = vmul.f32 %v346_v27, %v346_v27  ;;  %v349_v47 = vsub.f32 %v702_v30, %v773_v44 }
 0x110   :  { %v379_v1 = vmul.f32 %v347_v31, %v347_v31  ;;  %v350_v55 = vsub.f32 %v710_v34, %v773_v44  ;;  %v351_v63 = vsub.f32 %v724_v43, %v773_v44  ;;  %v352_v6 = vsub.f32 %v734_v52, %v773_v44 }
 0x111   :  { %v394_v8 = vadd.f32 %v393_v5, %v363_v28  ;;  %v380_v4 = vmul.f32 %v348_v38, %v348_v38  ;;  %v381_v28 = vmul.f32 %v349_v47, %v349_v47  ;;  %v353_v30 = vsub.f32 %v745_v60, %v773_v44 }
 0x112   :  { %v382_v7 = vmul.f32 %v350_v55, %v350_v55  ;;  %v354_v34 = vsub.f32 %v754_v3, %v773_v44  ;;  %v355_v43 = vsub.f32 %v763_v10, %v773_v44  ;;  %v356_v52 = vsub.f32 %v770_v16, %v773_v44 }
 0x113   :  { %v395_v11 = vadd.f32 %v394_v8, %v364_v32  ;;  %v383_v8 = vmul.f32 %v351_v63, %v351_v63  ;;  %v385_v45 = vmul.f32 %v353_v30, %v353_v30 }
 0x114   :  { %v388_v60 = vmul.f32 %v356_v52, %v356_v52 }
 0x115   :  { %v396_v13 = vadd.f32 %v395_v11, %v365_v37  ;;  %v384_v37 = vmul.f32 %v352_v6, %v352_v6 }
 0x117   :  { %v397_v15 = vadd.f32 %v396_v13, %v366_v12  ;;  %v386_v13 = vmul.f32 %v354_v34, %v354_v34 }
 0x119   :  { %v398_v18 = vadd.f32 %v397_v15, %v367_v14  ;;  %v387_v14 = vmul.f32 %v355_v43, %v355_v43 }
 0x11b   :  { %v399_v36 = vadd.f32 %v398_v18, %v368_v17 }
 0x11d   :  { %v400_v40 = vadd.f32 %v399_v36, %v369_v35 }
 0x11f   :  { %v401_v46 = vadd.f32 %v400_v40, %v370_v39 }
 0x121   :  { %v402_v49 = vadd.f32 %v401_v46, %v371_v42 }
 0x123   :  { %v403_v53 = vadd.f32 %v402_v49, %v372_v48 }
 0x125   :  { %v404_v56 = vadd.f32 %v403_v53, %v373_v51 }
 0x127   :  { %v405_v59 = vadd.f32 %v404_v56, %v374_v54 }
 0x129   :  { %v406_v19 = vadd.f32 %v405_v59, %v375_v57 }
 0x12b   :  { %v407_v21 = vadd.f32 %v406_v19, %v376_v61 }
 0x12d   :  { %v408_v23 = vadd.f32 %v407_v21, %v377_v62 }
 0x12f   :  { %v409_v2 = vadd.f32 %v408_v23, %v378_v0 }
 0x131   :  { %v410_v26 = vadd.f32 %v409_v2, %v379_v1 }
 0x133   :  { %v411_v5 = vadd.f32 %v410_v26, %v380_v4 }
 0x135   :  { %v412_v32 = vadd.f32 %v411_v5, %v381_v28 }
 0x137   :  { %v413_v9 = vadd.f32 %v412_v32, %v382_v7 }
 0x139   :  { %v414_v11 = vadd.f32 %v413_v9, %v383_v8 }
 0x13b   :  { %v415_v12 = vadd.f32 %v414_v11, %v384_v37 }
 0x13d   :  { %v416_v20 = vadd.f32 %v415_v12, %v385_v45 }
 0x13f   :  { %v417_v15 = vadd.f32 %v416_v20, %v386_v13 }
 0x141   :  { %v418_v22 = vadd.f32 %v417_v15, %v387_v14 }
 0x143   :  { %v419_v17 = vadd.f32 %v418_v22, %v388_v60 }
 0x145   :  { %v420_v18 = vrot.slane %v419_v17, 4 }
 0x147   :  { %v421_v25 = vadd.f32 %v420_v18, %v419_v17 }
 0x149   :  { %v422_v3 = vrot.slane %v421_v25, 2 }
 0x14b   :  { %v423_v35 = vadd.f32 %v422_v3, %v421_v25 }
 0x14d   :  { %v424_v10 = vrot.slane %v423_v35, 1 }
 0x14f   :  { %v425_v36 = vadd.f32 %v424_v10, %v423_v35 }
 0x151   :  { %427 = vst [vmem:[#allocation2 + $0x1] sm:$0x1] %v425_v36 }
 0x152   :  { %438 = dma.vmem_to_hbm [thread:$0]  %s434_s18, 128, %s436_s1, [#allocation3]  }
 0x153   :  { %589 = dma.done.wait [#allocation3], 128  }
 0x154   :  { %590 = vsyncadd [#allocation3], 4294967168 }
 0x155   :  { %443 = vsyncpa [#allocation3], 1 }

</bundles_post_ra>
